<compile_context>
chip_gen: v6e
topology: v6e:2x2x1
jax: 0.10.0
libtpu: 0.0.40
codegen_flags: <defaults>
</compile_context>

<pallas_src>
import functools
import math

import jax
import jax.numpy as jnp
from jax.experimental import pallas as pl
from jax.experimental.pallas import tpu as pltpu


def _round_up(a, b):
    return ((a + b - 1) // b) * b


def _choose_tile_n(n, tile_n_max):
    """Pick a lane-axis (batch) tile: multiple of 128, big, >=2 grid steps if possible."""
    target = _round_up(n, 128)
    if target >= 2 * 128:
        # Aim for at least 2 grid steps so both v7x TensorCores are used.
        tile = _round_up((target + 1) // 2, 128)
    else:
        tile = 128
    return min(tile, tile_n_max)


def _mlp_kernel(xt_ref, w_in_ref, b_in_ref, w_hid_ref, b_hid_ref,
                w_out_ref, b_out_ref, o_ref, *, num_hidden_layers):
    # Transposed compute: batch on the lane axis.
    #   xt      : (d_in, tile_n)
    #   w_in    : (H, d_in)      b_in : (H, 1)
    #   w_hid[l]: (H, H)         b_hid[l]: (H, 1)
    #   w_out   : (d_out, H)     b_out: (d_out, 1)
    #   o       : (d_out, tile_n)
    xt = xt_ref[...]

    # Input layer: (H, d_in) @ (d_in, tile_n) -> (H, tile_n); wide-N matmul.
    h = jnp.tanh(
        jnp.dot(w_in_ref[...], xt, preferred_element_type=jnp.float32)
        + b_in_ref[...]
    )

    # Middle layers: Linear + tanh, repeated (num_layers - 2) times (unrolled).
    for l in range(num_hidden_layers):
        h = jnp.tanh(
            jnp.dot(w_hid_ref[l], h, preferred_element_type=jnp.float32)
            + b_hid_ref[l]
        )

    # Output layer (no activation); lane-dense store over tile_n.
    o_ref[...] = (
        jnp.dot(w_out_ref[...], h, preferred_element_type=jnp.float32)
        + b_out_ref[...]
    ).astype(o_ref.dtype)


def mlp_forward(x, params, *, tile_n=None, tile_n_max=2048):
    """x: (N, input_dim) float32.  params: dict of weights (see init_params)."""
    w_in, b_in = params["w_in"], params["b_in"]          # (H, Din),   (H, 1)
    w_hid, b_hid = params["w_hid"], params["b_hid"]      # (L, H, H),  (L, H, 1)
    w_out, b_out = params["w_out"], params["b_out"]      # (Dout, H),  (Dout, 1)

    n, d_in = x.shape
    h_dim = w_in.shape[0]
    n_hidden = w_hid.shape[0]
    d_out = w_out.shape[0]

    # Handle num_layers == 2 (no hidden blocks) with a dummy stacked block.
    l_blk = max(n_hidden, 1)
    if n_hidden == 0:
        w_hid = jnp.zeros((1, h_dim, h_dim), jnp.float32)
        b_hid = jnp.zeros((1, h_dim, 1), jnp.float32)

    if tile_n is None:
        tile_n = _choose_tile_n(n, tile_n_max)
    tile_n = _round_up(tile_n, 128)

    # Pad batch up to a tile multiple (padded rows computed then discarded).
    n_pad = _round_up(n, tile_n)
    xt = x.T                                              # (d_in, N)
    if n_pad != n:
        xt = jnp.pad(xt, ((0, 0), (0, n_pad - n)))

    kernel = functools.partial(_mlp_kernel, num_hidden_layers=n_hidden)
    grid = (n_pad // tile_n,)

    out_t = pl.pallas_call(
        kernel,
        out_shape=jax.ShapeDtypeStruct((d_out, n_pad), jnp.float32),
        grid_spec=pltpu.PrefetchScalarGridSpec(
            num_scalar_prefetch=0,
            grid=grid,
            in_specs=[
                pl.BlockSpec((d_in, tile_n), lambda i: (0, i)),          # x^T tile
                pl.BlockSpec((h_dim, d_in), lambda i: (0, 0)),           # w_in
                pl.BlockSpec((h_dim, 1), lambda i: (0, 0)),              # b_in
                pl.BlockSpec((l_blk, h_dim, h_dim), lambda i: (0, 0, 0)),  # w_hid
                pl.BlockSpec((l_blk, h_dim, 1), lambda i: (0, 0, 0)),    # b_hid
                pl.BlockSpec((d_out, h_dim), lambda i: (0, 0)),          # w_out
                pl.BlockSpec((d_out, 1), lambda i: (0, 0)),              # b_out
            ],
            out_specs=pl.BlockSpec((d_out, tile_n), lambda i: (0, i)),
        ),
        compiler_params=pltpu.CompilerParams(
            dimension_semantics=("parallel",)),
    )(xt, w_in, b_in, w_hid, b_hid, w_out, b_out)

    # Back to (N, d_out) row-major layout expected by callers.
    return out_t.T[:n]


def init_params(key, input_dim, hidden_dim, output_dim, num_layers):
    """Deterministic init mimicking nn.Linear's U(-1/sqrt(fan_in), 1/sqrt(fan_in)).

    Weights are stored in PyTorch layout (out_features, in_features);
    biases as column vectors (out_features, 1) for the transposed kernel.
    """
    n_hidden = num_layers - 2
    keys = jax.random.split(key, 2 * (n_hidden + 2))

    def linear(kw, kb, fan_in, fan_out):
        bound = 1.0 / math.sqrt(fan_in)
        w = jax.random.uniform(kw, (fan_out, fan_in), jnp.float32, -bound, bound)
        b = jax.random.uniform(kb, (fan_out, 1), jnp.float32, -bound, bound)
        return w, b

    w_in, b_in = linear(keys[0], keys[1], input_dim, hidden_dim)

    w_hid_list, b_hid_list = [], []
    for i in range(n_hidden):
        w, b = linear(keys[2 + 2 * i], keys[3 + 2 * i], hidden_dim, hidden_dim)
        w_hid_list.append(w)
        b_hid_list.append(b)
    if n_hidden > 0:
        w_hid = jnp.stack(w_hid_list)                 # (L, H, H)
        b_hid = jnp.stack(b_hid_list)                 # (L, H, 1)
    else:
        w_hid = jnp.zeros((0, hidden_dim, hidden_dim), jnp.float32)
        b_hid = jnp.zeros((0, hidden_dim, 1), jnp.float32)

    w_out, b_out = linear(keys[-2], keys[-1], hidden_dim, output_dim)

    return dict(w_in=w_in, b_in=b_in, w_hid=w_hid, b_hid=b_hid,
                w_out=w_out, b_out=b_out)


def mlp_reference(x, params):
    """Pure-JAX reference replicating the PyTorch forward (row-major layout)."""
    h = jnp.tanh(x @ params["w_in"].T + params["b_in"].T)
    for l in range(params["w_hid"].shape[0]):
        h = jnp.tanh(h @ params["w_hid"][l].T + params["b_hid"][l].T)
    return h @ params["w_out"].T + params["b_out"].T


if __name__ == "__main__":
    # Shapes consistent with the UQPINN Burgers1d NN usage:
    #   input_dim=2 (x, t), hidden_dim=32, output_dim=1, num_layers=4.
    input_dim, hidden_dim, output_dim, num_layers = 2, 32, 1, 4
    batch = 256   # small demo batch; chosen tile=128 -> 2 "parallel" grid steps

    key = jax.random.PRNGKey(0)
    k_params, k_x = jax.random.split(key)
    params = init_params(k_params, input_dim, hidden_dim, output_dim, num_layers)
    x = jax.random.normal(k_x, (batch, input_dim), jnp.float32)

    out = mlp_forward(x, params)
    out = jax.block_until_ready(out)

    ref = mlp_reference(x, params)
    assert out.shape == (batch, output_dim)
    assert jnp.allclose(out, ref, atol=1e-5, rtol=1e-5), "mismatch vs reference"

    print("KERNEL_OK")
</pallas_src>

<mosaic_0001>
module attributes {stable_mosaic.version = 11 : i64} {
  func.func @_mlp_kernel(%arg0: i32, %arg1: memref<2x128xf32, #tpu.memory_space<vmem>>, %arg2: memref<32x2xf32, #tpu.memory_space<vmem>>, %arg3: memref<32x1xf32, #tpu.memory_space<vmem>>, %arg4: memref<2x32x32xf32, #tpu.memory_space<vmem>>, %arg5: memref<2x32x1xf32, #tpu.memory_space<vmem>>, %arg6: memref<1x32xf32, #tpu.memory_space<vmem>>, %arg7: memref<1x1xf32, #tpu.memory_space<vmem>>, %arg8: memref<1x128xf32, #tpu.memory_space<vmem>>) attributes {dimension_semantics = [#tpu.dimension_semantics<parallel>], iteration_bounds = array<i64: 2>, scalar_prefetch = 0 : i64, scratch_operands = 0 : i64, tpu.core_type = #tpu.core_type<tc>, window_params = [{transform_indices = @transform_0, window_bounds = array<i64: 2, 128>}, {pipeline_mode = #tpu.pipeline_mode<synchronous>, transform_indices = @transform_1, window_bounds = array<i64: 32, 2>}, {pipeline_mode = #tpu.pipeline_mode<synchronous>, transform_indices = @transform_2, window_bounds = array<i64: 32, 1>}, {pipeline_mode = #tpu.pipeline_mode<synchronous>, transform_indices = @transform_3, window_bounds = array<i64: 2, 32, 32>}, {pipeline_mode = #tpu.pipeline_mode<synchronous>, transform_indices = @transform_4, window_bounds = array<i64: 2, 32, 1>}, {pipeline_mode = #tpu.pipeline_mode<synchronous>, transform_indices = @transform_5, window_bounds = array<i64: 1, 32>}, {pipeline_mode = #tpu.pipeline_mode<synchronous>, transform_indices = @transform_6, window_bounds = array<i64: 1, 1>}, {transform_indices = @transform_7, window_bounds = array<i64: 1, 128>}]} {
    %c0 = arith.constant 0 : index
    %c0_0 = arith.constant 0 : index
    %0 = vector.load %arg1[%c0, %c0_0] : memref<2x128xf32, #tpu.memory_space<vmem>>, vector<2x128xf32>
    %c0_1 = arith.constant 0 : index
    %c0_2 = arith.constant 0 : index
    %1 = vector.load %arg2[%c0_1, %c0_2] : memref<32x2xf32, #tpu.memory_space<vmem>>, vector<32x2xf32>
    %cst = arith.constant dense<0.000000e+00> : vector<32x128xf32>
    %2 = tpu.matmul %1, %0, %cst {dimension_numbers = #tpu.dot_dimension_numbers<[1], [0], [0], [1], [0, 0, 1, 1], [], []>} : vector<32x2xf32>, vector<2x128xf32>, vector<32x128xf32> -> vector<32x128xf32>
    %c0_3 = arith.constant 0 : index
    %c0_4 = arith.constant 0 : index
    %3 = vector.load %arg3[%c0_3, %c0_4] : memref<32x1xf32, #tpu.memory_space<vmem>>, vector<32x1xf32>
    %4 = vector.broadcast %3 : vector<32x1xf32> to vector<32x128xf32>
    %5 = arith.addf %2, %4 : vector<32x128xf32>
    %6 = math.tanh %5 : vector<32x128xf32>
    %c0_5 = arith.constant 0 : index
    %c0_6 = arith.constant 0 : index
    %c0_7 = arith.constant 0 : index
    %7 = vector.load %arg4[%c0_5, %c0_6, %c0_7] : memref<2x32x32xf32, #tpu.memory_space<vmem>>, vector<1x32x32xf32>
    %8 = vector.shape_cast %7 : vector<1x32x32xf32> to vector<32x32xf32>
    %cst_8 = arith.constant dense<0.000000e+00> : vector<32x128xf32>
    %9 = tpu.matmul %8, %6, %cst_8 {dimension_numbers = #tpu.dot_dimension_numbers<[1], [0], [0], [1], [0, 0, 1, 1], [], []>} : vector<32x32xf32>, vector<32x128xf32>, vector<32x128xf32> -> vector<32x128xf32>
    %c0_9 = arith.constant 0 : index
    %c0_10 = arith.constant 0 : index
    %c0_11 = arith.constant 0 : index
    %10 = vector.load %arg5[%c0_9, %c0_10, %c0_11] : memref<2x32x1xf32, #tpu.memory_space<vmem>>, vector<1x32x1xf32>
    %11 = vector.shape_cast %10 : vector<1x32x1xf32> to vector<32x1xf32>
    %12 = vector.broadcast %11 : vector<32x1xf32> to vector<32x128xf32>
    %13 = arith.addf %9, %12 : vector<32x128xf32>
    %14 = math.tanh %13 : vector<32x128xf32>
    %c1 = arith.constant 1 : index
    %c0_12 = arith.constant 0 : index
    %c0_13 = arith.constant 0 : index
    %15 = vector.load %arg4[%c1, %c0_12, %c0_13] : memref<2x32x32xf32, #tpu.memory_space<vmem>>, vector<1x32x32xf32>
    %16 = vector.shape_cast %15 : vector<1x32x32xf32> to vector<32x32xf32>
    %cst_14 = arith.constant dense<0.000000e+00> : vector<32x128xf32>
    %17 = tpu.matmul %16, %14, %cst_14 {dimension_numbers = #tpu.dot_dimension_numbers<[1], [0], [0], [1], [0, 0, 1, 1], [], []>} : vector<32x32xf32>, vector<32x128xf32>, vector<32x128xf32> -> vector<32x128xf32>
    %c1_15 = arith.constant 1 : index
    %c0_16 = arith.constant 0 : index
    %c0_17 = arith.constant 0 : index
    %18 = vector.load %arg5[%c1_15, %c0_16, %c0_17] : memref<2x32x1xf32, #tpu.memory_space<vmem>>, vector<1x32x1xf32>
    %19 = vector.shape_cast %18 : vector<1x32x1xf32> to vector<32x1xf32>
    %20 = vector.broadcast %19 : vector<32x1xf32> to vector<32x128xf32>
    %21 = arith.addf %17, %20 : vector<32x128xf32>
    %22 = math.tanh %21 : vector<32x128xf32>
    %c0_18 = arith.constant 0 : index
    %c0_19 = arith.constant 0 : index
    %23 = vector.load %arg6[%c0_18, %c0_19] : memref<1x32xf32, #tpu.memory_space<vmem>>, vector<1x32xf32>
    %cst_20 = arith.constant dense<0.000000e+00> : vector<1x128xf32>
    %24 = tpu.matmul %23, %22, %cst_20 {dimension_numbers = #tpu.dot_dimension_numbers<[1], [0], [0], [1], [0, 0, 1, 1], [], []>} : vector<1x32xf32>, vector<32x128xf32>, vector<1x128xf32> -> vector<1x128xf32>
    %c0_21 = arith.constant 0 : index
    %c0_22 = arith.constant 0 : index
    %25 = vector.load %arg7[%c0_21, %c0_22] : memref<1x1xf32, #tpu.memory_space<vmem>>, vector<1x1xf32>
    %26 = vector.broadcast %25 : vector<1x1xf32> to vector<1x128xf32>
    %27 = arith.addf %24, %26 : vector<1x128xf32>
    %c0_23 = arith.constant 0 : index
    %c0_24 = arith.constant 0 : index
    %28 = vector.load %arg8[%c0_23, %c0_24] : memref<1x128xf32, #tpu.memory_space<vmem>>, vector<1x128xf32>
    tpu.vector_store %arg8[%c0_23, %c0_24], %27 {strides = array<i32>} : memref<1x128xf32, #tpu.memory_space<vmem>>, vector<1x128xf32>,
    return
  }
  func.func @transform_0(%arg0: i32) -> (i32, i32) {
    %c0_i32 = arith.constant 0 : i32
    %c0_i32_0 = arith.constant 0 : i32
    return %c0_i32, %arg0 : i32, i32
  }
  func.func @transform_1(%arg0: i32) -> (i32, i32) {
    %c0_i32 = arith.constant 0 : i32
    %c0_i32_0 = arith.constant 0 : i32
    %c0_i32_1 = arith.constant 0 : i32
    return %c0_i32, %c0_i32_0 : i32, i32
  }
  func.func @transform_2(%arg0: i32) -> (i32, i32) {
    %c0_i32 = arith.constant 0 : i32
    %c0_i32_0 = arith.constant 0 : i32
    %c0_i32_1 = arith.constant 0 : i32
    return %c0_i32, %c0_i32_0 : i32, i32
  }
  func.func @transform_3(%arg0: i32) -> (i32, i32, i32) {
    %c0_i32 = arith.constant 0 : i32
    %c0_i32_0 = arith.constant 0 : i32
    %c0_i32_1 = arith.constant 0 : i32
    %c0_i32_2 = arith.constant 0 : i32
    return %c0_i32, %c0_i32_0, %c0_i32_1 : i32, i32, i32
  }
  func.func @transform_4(%arg0: i32) -> (i32, i32, i32) {
    %c0_i32 = arith.constant 0 : i32
    %c0_i32_0 = arith.constant 0 : i32
    %c0_i32_1 = arith.constant 0 : i32
    %c0_i32_2 = arith.constant 0 : i32
    return %c0_i32, %c0_i32_0, %c0_i32_1 : i32, i32, i32
  }
  func.func @transform_5(%arg0: i32) -> (i32, i32) {
    %c0_i32 = arith.constant 0 : i32
    %c0_i32_0 = arith.constant 0 : i32
    %c0_i32_1 = arith.constant 0 : i32
    return %c0_i32, %c0_i32_0 : i32, i32
  }
  func.func @transform_6(%arg0: i32) -> (i32, i32) {
    %c0_i32 = arith.constant 0 : i32
    %c0_i32_0 = arith.constant 0 : i32
    %c0_i32_1 = arith.constant 0 : i32
    return %c0_i32, %c0_i32_0 : i32, i32
  }
  func.func @transform_7(%arg0: i32) -> (i32, i32) {
    %c0_i32 = arith.constant 0 : i32
    %c0_i32_0 = arith.constant 0 : i32
    return %c0_i32, %arg0 : i32, i32
  }
}

</mosaic_0001>

<bundles_post_ra>
// kernel: tpu_custom_call.1
= control target key start
LH: loop header
LB: loop body
LE: loop exit
PB: predicated region body
PF: predicated region fallthrough
CT: control target
= control target key end

     0   :  { %s1285_s0 = inlined_call_operand.vmem [shape: f32[2,256], index: 0, kind: input, shape index: {}]   ;;  %s1286_s1 = inlined_call_operand.vmem [shape: f32[32,2], index: 1, kind: input, shape index: {}]   ;;  %s1287_s2 = inlined_call_operand.vmem [shape: f32[32,1], index: 2, kind: input, shape index: {}]   ;;  %s1288_s3 = inlined_call_operand.vmem [shape: f32[2,32,32], index: 3, kind: input, shape index: {}]   ;;  %s1289_s4 = inlined_call_operand.vmem [shape: f32[2,32,1], index: 4, kind: input, shape index: {}]   ;;  %s1290_s5 = inlined_call_operand.vmem [shape: f32[1,32], index: 5, kind: input, shape index: {}]   ;;  %s1291_s6 = inlined_call_operand.<no memory space> [shape: f32[1,1], index: 6, kind: input, shape index: {}]   ;;  %s1292_s7 = inlined_call_operand.hbm [shape: f32[1,256], index: 7, kind: output, shape index: {}]  }
   0x1   :  { %v12_v0 = vstv %s1291_s6 }
   0x2   :  { %13 = vst [vmem:[#allocation2] sm:$0x1] %v12_v0 }
   0x3   :  { %14 = vsyncpa [#allocation4], 0 }
   0x4   :  { %16 = vsyncpa [#allocation4 + $0x1], 0  ;;  %s1104_s26 = smov 0   ;;  %s1106_s27 = smov 0  }
   0x5   :  { %s1108_s28 = smov 0   ;;  %s1110_s29 = smov 0  }
   0x6 LB: > { %s1125_s6 = sadd.s32 4294967295, %s1055_s29   ;;  %s824_s30 = sadd.s32 4294967294, %s1055_s29   ;;  %s1055_s29 = sphi %s1110_s29, %s1298_s29   ;;  %s1051_s28 = sphi %s1108_s28, %s1297_s28   ;;  %s1047_s27 = sphi %s1106_s27, %s1296_s27   ;;  %s1043_s26 = sphi %s1104_s26, %s1295_s26  }
   0x7   : > { %s1129_s8 = sadd.s32 1, %s1055_s29   ;;  %s181_s9 = sadd.s32 1, %s1051_s28 }
   0x8   : > { %s178_s10 = ssub.s32 %s1055_s29, %s1129_s8  ;;  %p191_p0 = scmp.ne.s32.totalorder %s1051_s28, %s1047_s27 }
   0x9   : > { %p179_p1 = scmp.eq.s32.totalorder %s178_s10, 0  ;;  %p192_p2 = scmp.eq.s32.totalorder %s1125_s6, 1 }
   0xa   : > { %p197_p3 = scmp.ne.s32.totalorder %s1047_s27, %s1043_s26  ;;  %p198_p4 = scmp.eq.s32.totalorder %s824_s30, 1 }
   0xb   : > { %s1140_s11 = scalar_select %p179_p1, %s1051_s28, %s181_s9  }
   0xc   : > { %p1142_p5 = por %p192_p2, %p191_p0  ;;  %p1146_p6 = por %p198_p4, %p197_p3 }
   0xd   : > { %p827_p7 = scmp.ge.s32.totalorder %s1055_s29, 1  ;;  %p241_p8 = scmp.lt.s32.totalorder %s1055_s29, 3 }
   0xf   : > { %p242_p9 = pnand %p827_p7, %p241_p8 }
  0x10   : > { %p271_p10 = scmp.lt.s32.totalorder (!%p242_p9), %s1125_s6, 1  ;;  %s269_s24 = sand.u32 (!%p242_p9), 1, %s1047_s27  }
  0x11   : > { %245 = sbr.rel (%p242_p9) target bundleno = 899 (0x383), region = 48  ;;  %s851_s25 = sshll.u32 (!%p242_p9), %s1125_s6, 4 }
  0x12   : > { %s1250_s15 = scalar_lea.hbm (!%p242_p9), %s1292_s7, %s851_s25  ;;  %s757_s16 = scalar_lea.sflag (!%p242_p9), [#allocation4], %s269_s24 }
  0x16   : > { %v276_v1 = vld [vmem:[%s1286_s1] sm:$0xff]  ;;  %vm304_vm0 = vcmask 15360   ;;  %v283_v2 = vld [vmem:[%s1287_s2 + $0x18] sm:$0xff]  ;;  %s272_s18 = scalar_select %p271_p10, %s1125_s6, 1  ;;  %v1057_v3 = vmov 0   ;;  %v281_v4 = vld [vmem:[%s1287_s2 + $0x8] sm:$0xff] }
  0x17   : > { %882 = vmatprep.mubr.msk.f32.mxu0 %vm304_vm0, %v276_v1  ;;  %969 = vset.pattern.permute.xlu0 %v1057_v3  ;;  %vm317_vm1 = vcmask 1041408   ;;  %v282_v5 = vld [vmem:[%s1287_s2 + $0x10] sm:$0xff]  ;;  %v280_v6 = vld [vmem:[%s1287_s2] sm:$0xff]  ;;  %v277_v8 = vld [vmem:[%s1286_s1 + $0x8] sm:$0xff]  ;;  %vm438_vm2 = vcmask 261120   ;;  %v1058_v60 = vmov 0.0  }
  0x18   : > { %970 = vset.pattern.permute.xlu1 %v1057_v3  ;;  %301 = vperm.xlu0 %969, %v283_v2   ;;  %s828_s21 = sshll.u32 %s272_s18, 1  ;;  %v278_v9 = vld [vmem:[%s1286_s1 + $0x10] sm:$0xff]  ;;  %v417_v10 = vld [vmem:[%s1289_s4 + $0x18] sm:$0xff]  ;;  %v415_v13 = vld [vmem:[%s1289_s4 + $0x8] sm:$0xff]  ;;  %vm1059_vm3 = vmmov 0   ;;  %s1060_s6 = smov [#allocation3]  }
  0x19   : > { %291 = vperm.xlu1 %970, %v281_v4   ;;  %s274_s30 = scalar_lea.vmem %s1285_s0, %s828_s21  ;;  %v416_v11 = vld [vmem:[%s1289_s4 + $0x10] sm:$0xff]  ;;  %v279_v12 = vld [vmem:[%s1286_s1 + $0x18] sm:$0xff]  ;;  %v414_v14 = vld [vmem:[%s1289_s4] sm:$0xff]  ;;  %s999_s18 = sshll.u32 %s1060_s6, 4  ;;  %s1000_s18 = int_to_ptr.vmem [resolvable:$false] %s999_s18 }
  0x1a   : > { %v275_v7 = vld [vmem:[%s274_s30] sm:$0x3]  ;;  %v845_v15 = vld [vmem:[%s1289_s4 + $0x38] sm:$0xff]  ;;  %v844_v16 = vld [vmem:[%s1289_s4 + $0x30] sm:$0xff]  ;;  %s270_s30 = scalar_lea.vmem [#allocation3], %s269_s24  ;;  %s1001_s19 = scalar_lea.vmem %s1000_s18, 32 }
  0x1b   : > { %880 = vmatprep.subr.msk.mxu0 %vm317_vm1, %v275_v7  ;;  %v843_v17 = vld [vmem:[%s1289_s4 + $0x28] sm:$0xff]  ;;  %v842_v18 = vld [vmem:[%s1289_s4 + $0x20] sm:$0xff]  ;;  %v412_v38 = vld [vmem:[%s1288_s3 + $0x10] sm:$0xff]  ;;  %s769_s9 = sshll.u32 %s270_s30, 4  ;;  %s770_s9 = int_to_ptr.vmem [resolvable:$true] %s769_s9 }
  0x1c   : > { %296 = vperm.xlu0 %969, %v282_v5   ;;  %881 = vmatpush3.msk.msra.mxu0 %vm317_vm1, %v275_v7  ;;  %v672_v19 = vld [vmem:[#allocation2] sm:$0x1]  ;;  %v411_v37 = vld [vmem:[%s1288_s3 + $0x8] sm:$0xff]  ;;  %v413_v39 = vld [vmem:[%s1288_s3 + $0x18] sm:$0xff]  ;;  %s995_s17 = scalar_lea.vmem %s770_s9, 16  ;;  %p1002_p0 = scmp.lt.s32.totalorder %s770_s9, %s1000_s18 }
  0x1d   : > { %286 = vperm.xlu1 %970, %v280_v6   ;;  %883 = vmatmul.mubr.msk.f32.vlgmr.msra.gmra.mxu0 %vm304_vm0, %v277_v8  ;;  %v410_v20 = vld [vmem:[%s1288_s3] sm:$0xff]  ;;  %v839_v57 = vld [vmem:[%s1288_s3 + $0x28] sm:$0xff]  ;;  %v840_v58 = vld [vmem:[%s1288_s3 + $0x30] sm:$0xff]  ;;  %p996_p11 = scmp.ne.s32.totalorder %s770_s9, %s995_s17  ;;  %p1003_p1 = scmp.lt.s32.totalorder %s1001_s19, %s995_s17 }
  0x1e   : > { %885 = vmatprep.mubr.msk.f32.mxu0 %vm304_vm0, %v278_v9  ;;  %896 = vmatprep.mubr.msk.f32.mxu1 %vm438_vm2, %v410_v20  ;;  %v838_v40 = vld [vmem:[%s1288_s3 + $0x20] sm:$0xff]  ;;  %v841_v59 = vld [vmem:[%s1288_s3 + $0x38] sm:$0xff] }
  0x1f   : > { %p997_p12 = pnand %p996_p11, %p1142_p5  ;;  %p1004_p2 = por %p1003_p1, %p1002_p0 }
  0x20   : > { %435 = vperm.xlu0 %969, %v417_v10  }
  0x21   : > { %430 = vperm.xlu1 %970, %v416_v11   ;;  %886 = vmatmul.mubr.msk.f32.gmra.mxu0 %vm304_vm0, %v279_v12  ;;  %v671_v12 = vld [vmem:[%s1290_s5] sm:$0x1]  ;;  %p998_p13 = pneg %p997_p12 }
  0x22   : > { %910 = vmatprep.mubr.msk.f32.mxu0 %vm438_vm2, %v838_v40 }
  0x23   : > { %p1005_p3 = pnand %p1004_p2, %p998_p13 }
  0x24   : > { %425 = vperm.xlu0 %969, %v415_v13  }
  0x25   : > { %420 = vperm.xlu1 %970, %v414_v14   ;;  %v678_v14 = vlaneseq }
  0x28   : > { %567 = vperm.xlu0 %969, %v845_v15   ;;  %v679_v15 = vshrl.u32 %v678_v14, 7 }
  0x29   : > { %562 = vperm.xlu1 %970, %v844_v16  }
  0x2a   : > { %v680_v16 = vsub.s32 0, %v679_v15 }
  0x2c   : > { %557 = vperm.xlu0 %969, %v843_v17  }
  0x2d   : > { %552 = vperm.xlu1 %970, %v842_v18  }
  0x30   : > { %675 = vperm.xlu0 %969, %v672_v19  }
  0x93   : > { %v302_v21 = vpop.permute.xlu0 %301 }
  0x94   : > { %v292_v23 = vpop.permute.xlu1 %291 }
  0x97   : > { %v297_v27 = vpop.permute.xlu0 %296 }
  0x98   : > { %v287_v31 = vpop.permute.xlu1 %286 }
  0x9b   : > { %v436_v41 = vpop.permute.xlu0 %435 }
  0x9c   : > { %v431_v43 = vpop.permute.xlu1 %430 }
  0x9f   : > { %v426_v47 = vpop.permute.xlu0 %425 }
  0xa0   : > { %v421_v51 = vpop.permute.xlu1 %420 }
  0xa3   : > { %v568_v61 = vpop.permute.xlu0 %567 }
  0xa4   : > { %v563_v63 = vpop.permute.xlu1 %562 }
  0xa7   : > { %v558_v3 = vpop.permute.xlu0 %557 }
  0xa8   : > { %v553_v7 = vpop.permute.xlu1 %552 }
  0xab   : > { %v676_v17 = vpop.permute.xlu0 %675 }
  0xac   : > { %v681_v18 = vrot.slane %v676_v17, %v680_v16 }
  0xdd   : > { %v884_v22 = vpop.f32.mrf.mxu0 }
  0xde   : > { %v393_v29 = vadd.f32 %v884_v22, %v292_v23 }
  0xdf   : > { %v387_v24 = vpop.f32.mrf.mxu0 }
  0xe0   : > { %v388_v32 = vadd.f32 %v387_v24, %v287_v31 }
  0xe1   : > { %v887_v25 = vpop.f32.mrf.mxu0 }
  0xe2   : > { %v403_v26 = vadd.f32 %v887_v25, %v302_v21 }
  0xe3   : > { %v397_v28 = vpop.f32.mrf.mxu0 }
  0xe4   : > { %971 = vtanh.f32 %v403_v26  ;;  %v398_v30 = vadd.f32 %v397_v28, %v297_v27 }
  0xe6   : > { %973 = vtanh.f32 %v398_v30 }
  0xe7   : > { %975 = vtanh.f32 %v393_v29 }
  0xe8   : > { %977 = vtanh.f32 %v388_v32 }
  0xf1   : > { %v972_v33 = vpop.eup %971 }
  0xf2   : > { %888 = vmatprep.subr.mxu1 %v972_v33 }
  0xf3   : > { %v974_v34 = vpop.eup %973  ;;  %889 = vmatpush3.msra.mxu1 %v972_v33 }
  0xf4   : > { %890 = vmatprep.subr.mxu1 %v974_v34  ;;  %v976_v35 = vpop.eup %975 }
  0xf5   : > { %891 = vmatpush3.msra.mxu1 %v974_v34  ;;  %v978_v36 = vpop.eup %977 }
  0xf6   : > { %892 = vmatprep.subr.mxu1 %v976_v35 }
  0xf7   : > { %893 = vmatpush3.msra.mxu1 %v976_v35 }
  0xf8   : > { %894 = vmatprep.subr.mxu1 %v978_v36 }
  0xf9   : > { %895 = vmatpush3.msra.mxu1 %v978_v36 }
  0xfa   : > { %897 = vmatmul.mubr.msk.f32.vlgmr.msra.gmra.mxu1 %vm438_vm2, %v411_v37  ;;  %916 = vmatprep.subr.mxu1 %v1058_v60 }
  0xfb   : > { %899 = vmatprep.mubr.msk.f32.mxu1 %vm438_vm2, %v412_v38 }
  0xfe   : > { %900 = vmatmul.mubr.msk.f32.gmra.mxu1 %vm438_vm2, %v413_v39 }
  0xff   : > { %924 = vmatprep.mubr.msk.f32.mxu1 %vm1059_vm3, %v1058_v60 }
 0x1ba   : > { %v898_v42 = vpop.f32.mrf.mxu1 }
 0x1bb   : > { %v523_v49 = vadd.f32 %v898_v42, %v426_v47 }
 0x1bc   : > { %v517_v44 = vpop.f32.mrf.mxu1 }
 0x1bd   : > { %v518_v52 = vadd.f32 %v517_v44, %v421_v51 }
 0x1be   : > { %v901_v45 = vpop.f32.mrf.mxu1 }
 0x1bf   : > { %v533_v46 = vadd.f32 %v901_v45, %v436_v41 }
 0x1c0   : > { %v527_v48 = vpop.f32.mrf.mxu1 }
 0x1c1   : > { %979 = vtanh.f32 %v533_v46  ;;  %v528_v50 = vadd.f32 %v527_v48, %v431_v43 }
 0x1c3   : > { %981 = vtanh.f32 %v528_v50 }
 0x1c4   : > { %983 = vtanh.f32 %v523_v49 }
 0x1c5   : > { %985 = vtanh.f32 %v518_v52 }
 0x1ce   : > { %v980_v53 = vpop.eup %979 }
 0x1cf   : > { %902 = vmatprep.subr.mxu0 %v980_v53 }
 0x1d0   : > { %v982_v54 = vpop.eup %981  ;;  %903 = vmatpush3.msra.mxu0 %v980_v53 }
 0x1d1   : > { %904 = vmatprep.subr.mxu0 %v982_v54  ;;  %v984_v55 = vpop.eup %983 }
 0x1d2   : > { %905 = vmatpush3.msra.mxu0 %v982_v54  ;;  %v986_v56 = vpop.eup %985 }
 0x1d3   : > { %906 = vmatprep.subr.mxu0 %v984_v55 }
 0x1d4   : > { %907 = vmatpush3.msra.mxu0 %v984_v55 }
 0x1d5   : > { %908 = vmatprep.subr.mxu0 %v986_v56 }
 0x1d6   : > { %909 = vmatpush3.msra.mxu0 %v986_v56 }
 0x1d7   : > { %911 = vmatmul.mubr.msk.f32.vlgmr.msra.gmra.mxu0 %vm438_vm2, %v839_v57 }
 0x1d8   : > { %913 = vmatprep.mubr.msk.f32.mxu0 %vm438_vm2, %v840_v58 }
 0x1db   : > { %914 = vmatmul.mubr.msk.f32.gmra.mxu0 %vm438_vm2, %v841_v59 }
 0x297   : > { %v912_v62 = vpop.f32.mrf.mxu0 }
 0x298   : > { %v654_v5 = vadd.f32 %v912_v62, %v558_v3 }
 0x299   : > { %v648_v0 = vpop.f32.mrf.mxu0 }
 0x29a   : > { %v649_v8 = vadd.f32 %v648_v0, %v553_v7 }
 0x29b   : > { %v915_v1 = vpop.f32.mrf.mxu0 }
 0x29c   : > { %v664_v2 = vadd.f32 %v915_v1, %v568_v61 }
 0x29d   : > { %v658_v4 = vpop.f32.mrf.mxu0 }
 0x29e   : > { %987 = vtanh.f32 %v664_v2  ;;  %v659_v6 = vadd.f32 %v658_v4, %v563_v63 }
 0x2a0   : > { %989 = vtanh.f32 %v659_v6 }
 0x2a1   : > { %991 = vtanh.f32 %v654_v5 }
 0x2a2   : > { %993 = vtanh.f32 %v649_v8 }
 0x2ab   : > { %v988_v9 = vpop.eup %987 }
 0x2ac   : > { %917 = vmatpush3.msra.mxu1 %v988_v9 }
 0x2ad   : > { %v990_v10 = vpop.eup %989  ;;  %918 = vmatprep.subr.mxu1 %v1058_v60 }
 0x2ae   : > { %919 = vmatpush3.msra.mxu1 %v990_v10  ;;  %v992_v11 = vpop.eup %991 }
 0x2af   : > { %920 = vmatprep.subr.mxu1 %v1058_v60  ;;  %v994_v13 = vpop.eup %993 }
 0x2b0   : > { %921 = vmatpush3.msra.mxu1 %v992_v11 }
 0x2b1   : > { %922 = vmatprep.subr.mxu1 %v1058_v60 }
 0x2b2   : > { %923 = vmatpush3.msra.mxu1 %v994_v13 }
 0x2b3   : > { %925 = vmatmul.mubr.msk.f32.vlgmr.msra.gmra.mxu1 %vm438_vm2, %v671_v12 }
 0x373   : > { %v751_v19 = vpop.f32.mrf.mxu1 }
 0x374   : > { %v752_v20 = vadd.f32 %v751_v19, %v681_v18 }
 0x375   : > { %v926_v21 = vpop.f32.mrf.mxu1 }
 0x376   : > { %755 = vst [vmem:[%s270_s30] sm:$0x1] %v752_v20 }
 0x377   : > { %1008 = shalt.err (!%p1005_p3)
}
 0x378   : > { %s1009_s20 = scalar_lea.hbm %s1250_s15, 16  ;;  %s1013_s23 = scalar_lea.hbm %s1292_s7, 32 }
 0x379   : > { %p1010_p4 = scmp.ne.s32.totalorder %s1250_s15, %s1009_s20  ;;  %p1014_p9 = scmp.lt.s32.totalorder %s1250_s15, %s1292_s7 }
 0x37a   : > { %p1015_p10 = scmp.lt.s32.totalorder %s1013_s23, %s1009_s20 }
 0x37b   : > { %p1011_p7 = pnand %p1010_p4, %p1142_p5 }
 0x37c   : > { %p1016_p11 = por %p1015_p10, %p1014_p9 }
 0x37d   : > { %p1012_p8 = pneg %p1011_p7 }
 0x37f   : > { %p1017_p12 = pnand %p1016_p11, %p1012_p8 }
 0x381   : > { %1020 = shalt.err (!%p1017_p12)
}
 0x382   : > { %927 = dma.vmem_to_hbm [thread:$0]  (%p1142_p5), %s770_s9, 16, %s1250_s15, %s757_s16  }
 0x383 PF: > { %p933_p13 = scmp.ge.s32.totalorder %s1055_s29, 2  ;;  %s781_s30 = sand.u32 1, %s1043_s26  }
 0x384   : > { %s782_s10 = scalar_lea.sflag [#allocation4], %s781_s30 }
 0x385   : > { %p930_p0 = pnand %p933_p13, %p1146_p6 }
 0x387   : > { %p931_p1 = pneg %p930_p0 }
 0x389   : > { %1038 = dma.done.wait (%p931_p1), %s782_s10, 16  }
 0x38a   : > { %1040 = vsyncadd (%p931_p1), %s782_s10, 4294967280  ;;  %p19_p2 = scmp.ge.s32.totalorder %s1129_s8, 4   ;;  %s1295_s26 = smov %s1047_s27 }
 0x38b   : > { %s1296_s27 = smov %s1051_s28  ;;  %s1297_s28 = smov %s1140_s11 }
 0x38c   : > { %s1298_s29 = smov %s1129_s8  ;;  %21 = sbr.rel (!%p19_p2) target bundleno = 6 (0x6), region = 85 }
 0x391   :  { %786 = vsyncpa [#allocation4], 1 }
 0x392   :  { %788 = vsyncpa [#allocation4 + $0x1], 1 }

</bundles_post_ra>
